<compile_context>
chip_gen: v7x
topology: tpu7x:2x2x1
jax: 0.10.0
libtpu: 0.0.40
codegen_flags: <defaults>
</compile_context>

<pallas_src>
import functools

import jax
import jax.numpy as jnp
from jax.experimental import pallas as pl
from jax.experimental.pallas import tpu as pltpu


def _round_up(x, m):
    return (x + m - 1) // m * m


# ----------------------------------------------------------------------------
# Fused Pallas kernel: conv backbone (im2col GEMM) -> RoI avg-pool -> FC head.
# Single grid step; every intermediate stays in VMEM / vregs.
# ----------------------------------------------------------------------------
def _fused_extractor_kernel(lhs_ref, wc_ref, mask_ref, wf_ref, bf_ref, o_ref):
    """
    lhs_ref : (B*P, KPAD)   im2col of the 3x3 SAME conv + constant-1 bias column
    wc_ref  : (KPAD, CMID)  conv weights with bias row folded in
    mask_ref: (B*R, B*P)    block-diagonal normalized RoI-average masks
    wf_ref  : (CMID, F_PAD) FC weights (output dim zero-padded to 128)
    bf_ref  : (1, F_PAD)    FC bias (zero-padded)
    o_ref   : (B*R, F_PAD)  roi_features (lane-dense, unmasked store)
    """
    # 3x3 SAME conv + bias + ReLU as ONE MXU matmul (bias via the 1-column).
    feat = jnp.dot(lhs_ref[...], wc_ref[...], preferred_element_type=jnp.float32)
    feat = jnp.maximum(feat, 0.0)                                   # (B*P, CMID)

    # RoI average pooling for the whole batch: block-diagonal mask GEMM.
    pooled = jnp.dot(mask_ref[...], feat, preferred_element_type=jnp.float32)

    # FC head + bias + ReLU -> lane-dense (B*R, F_PAD) store.
    out = jnp.dot(pooled, wf_ref[...], preferred_element_type=jnp.float32)
    out = jnp.maximum(out + bf_ref[...], 0.0)
    o_ref[...] = out.astype(o_ref.dtype)


@functools.partial(jax.jit, static_argnames=("feat_dim",))
def _extract_features(images_nchw, mask_bd, wc_aug, wf_pad, bf_pad, *, feat_dim):
    """Jitted wrapper: im2col preprocessing + one fused pallas_call."""
    x = jnp.transpose(images_nchw, (0, 2, 3, 1)).astype(jnp.float32)   # NHWC
    B, H, W, cin = x.shape
    kpad = wc_aug.shape[0]
    cmid = wc_aug.shape[1]
    f_pad = wf_pad.shape[1]
    BR, BP = mask_bd.shape
    R = BR // B

    # im2col for a 3x3 SAME conv, tap-major channel order, + constant-1 column
    # (folds the conv bias into the GEMM), zero-padded to KPAD lanes.
    xp = jnp.pad(x, ((0, 0), (1, 1), (1, 1), (0, 0)))
    cols = jnp.concatenate([xp[:, dh:dh + H, dw:dw + W, :]
                            for dh in range(3) for dw in range(3)], axis=-1)
    lhs = jnp.concatenate([cols.reshape(B, H * W, 9 * cin),
                           jnp.ones((B, H * W, 1), jnp.float32)], axis=-1)
    lhs = jnp.pad(lhs, ((0, 0), (0, 0), (0, kpad - 9 * cin - 1)))
    lhs = lhs.reshape(B * H * W, kpad)                                  # (B*P, KPAD)

    out = pl.pallas_call(
        _fused_extractor_kernel,
        out_shape=jax.ShapeDtypeStruct((BR, f_pad), jnp.float32),
        grid=(1,),
        in_specs=[
            pl.BlockSpec((B * H * W, kpad), lambda i: (0, 0)),
            pl.BlockSpec((kpad, cmid), lambda i: (0, 0)),
            pl.BlockSpec((BR, BP), lambda i: (0, 0)),
            pl.BlockSpec((cmid, f_pad), lambda i: (0, 0)),
            pl.BlockSpec((1, f_pad), lambda i: (0, 0)),
        ],
        out_specs=pl.BlockSpec((BR, f_pad), lambda i: (0, 0)),
        compiler_params=pltpu.CompilerParams(
            dimension_semantics=("arbitrary",)),
    )(lhs, wc_aug, mask_bd, wf_pad, bf_pad)

    return out.reshape(B, R, f_pad)[..., :feat_dim]                     # (B, R, feat_dim)


# ----------------------------------------------------------------------------
# Wrapper module
# ----------------------------------------------------------------------------
class FeatureExtractorPallas:
    """roi_features extractor (simplified GeneralizedRCNN head) in Pallas."""

    LANE = 128

    def __init__(self, cin=3, cmid=32, feat_dim=64, max_detections=8, seed=0):
        self.cin, self.cmid, self.feat_dim = cin, cmid, feat_dim
        self.max_detections = max_detections
        self.feat_pad = _round_up(feat_dim, self.LANE)
        self.kpad = _round_up(9 * cin + 1, 8)          # 27 taps + bias col -> 32

        k1, k2, k3, k4 = jax.random.split(jax.random.PRNGKey(seed), 4)
        # logical weights (used by the pure-JAX reference)
        self.w_conv = jax.random.normal(k1, (9 * cin, cmid), jnp.float32) * 0.05
        self.b_conv = jax.random.normal(k2, (1, cmid), jnp.float32) * 0.01
        self.w_fc = jax.random.normal(k3, (cmid, feat_dim), jnp.float32) * 0.05
        self.b_fc = jax.random.normal(k4, (1, feat_dim), jnp.float32) * 0.01

        # kernel-side weights: conv bias folded in as an extra row, K padded to
        # a sublane multiple; FC output zero-padded to 128 lanes (exact zeros
        # through ReLU, sliced off afterwards).
        self.wc_aug = jnp.concatenate(
            [self.w_conv, self.b_conv,
             jnp.zeros((self.kpad - 9 * cin - 1, cmid), jnp.float32)], axis=0)
        self.wf_pad = jnp.pad(self.w_fc, ((0, 0), (0, self.feat_pad - feat_dim)))
        self.bf_pad = jnp.pad(self.b_fc, ((0, 0), (0, self.feat_pad - feat_dim)))

        self._mask_cache = {}                          # (B, H, W) -> block-diag mask

    # ----- fixed deterministic RoI boxes (stand-in for RPN + NMS) -----------
    @staticmethod
    def _default_boxes(H, W, max_det):
        h2, w2 = H // 2, W // 2
        boxes = jnp.array(
            [[0, 0, h2, w2], [0, w2, h2, W], [h2, 0, H, w2], [h2, w2, H, W],
             [H // 4, W // 4, 3 * H // 4, 3 * W // 4], [0, 0, H, W],
             [1, 1, H - 1, w2 + 2], [h2 - 2, 1, H - 1, W - 1]],
            dtype=jnp.int32)
        return boxes[:max_det]

    # ----- normalized RoI-average masks on the H*W pixel grid ---------------
    @staticmethod
    def _roi_masks(boxes, H, W):
        ys = jnp.arange(H)[:, None]
        xs = jnp.arange(W)[None, :]
        y0, x0, y1, x1 = (boxes[:, i] for i in range(4))
        inside = ((ys[None] >= y0[:, None, None]) & (ys[None] < y1[:, None, None]) &
                  (xs[None] >= x0[:, None, None]) & (xs[None] < x1[:, None, None])
                  ).astype(jnp.float32)
        counts = jnp.maximum(inside.sum(axis=(1, 2), keepdims=True), 1.0)
        return (inside / counts).reshape(boxes.shape[0], H * W)

    def _block_diag_masks(self, B, H, W):
        key = (B, H, W)
        if key not in self._mask_cache:
            boxes = self._default_boxes(H, W, self.max_detections)
            masks = self._roi_masks(boxes, H, W)                       # (R, H*W)
            self._mask_cache[key] = jax.device_put(
                jnp.kron(jnp.eye(B, dtype=jnp.float32), masks))        # (B*R, B*H*W)
        return self._mask_cache[key]

    def __call__(self, images_nchw):
        B, cin, H, W = images_nchw.shape
        assert cin == self.cin
        mask_bd = self._block_diag_masks(B, H, W)
        return _extract_features(images_nchw, mask_bd, self.wc_aug,
                                 self.wf_pad, self.bf_pad,
                                 feat_dim=self.feat_dim)

    # ----- pure-JAX reference of the same forward pass (for verification) ---
    def reference(self, images_nchw):
        x = jnp.transpose(images_nchw, (0, 2, 3, 1)).astype(jnp.float32)
        B, H, W, cin = x.shape
        xp = jnp.pad(x, ((0, 0), (1, 1), (1, 1), (0, 0)))
        cols = jnp.concatenate([xp[:, dh:dh + H, dw:dw + W, :]
                                for dh in range(3) for dw in range(3)], axis=-1)
        feat = jnp.maximum(cols.reshape(B * H * W, 9 * cin) @ self.w_conv
                           + self.b_conv, 0.0).reshape(B, H * W, self.cmid)
        boxes = self._default_boxes(H, W, self.max_detections)
        masks = self._roi_masks(boxes, H, W)                           # (R, H*W)
        pooled = jnp.einsum('rp,bpc->brc', masks, feat)
        out = jnp.einsum('brc,cd->brd', pooled, self.w_fc) + self.b_fc
        return jnp.maximum(out, 0.0)


# ----------------------------------------------------------------------------
if __name__ == "__main__":
    key = jax.random.PRNGKey(0)
    B, Cin, H, W = 2, 3, 16, 16
    images = jax.random.uniform(key, (B, Cin, H, W), jnp.float32)      # NCHW input

    extractor = FeatureExtractorPallas(cin=Cin, cmid=32, feat_dim=64,
                                       max_detections=8, seed=0)
    roi_features = extractor(images)
    jax.block_until_ready(roi_features)

    assert roi_features.shape == (B, 8, 64)
    assert roi_features.dtype == jnp.float32
    assert bool(jnp.all(jnp.isfinite(roi_features)))

    ref = extractor.reference(images)
    assert bool(jnp.allclose(roi_features, ref, atol=3e-3, rtol=3e-2)), (
        float(jnp.max(jnp.abs(roi_features - ref))))

    print("KERNEL_OK")
</pallas_src>

<mosaic_0001>
module attributes {stable_mosaic.version = 11 : i64} {
  func.func @_fused_extractor_kernel(%arg0: i32, %arg1: memref<512x32xf32, #tpu.memory_space<vmem>>, %arg2: memref<32x32xf32, #tpu.memory_space<vmem>>, %arg3: memref<16x512xf32, #tpu.memory_space<vmem>>, %arg4: memref<32x128xf32, #tpu.memory_space<vmem>>, %arg5: memref<1x128xf32, #tpu.memory_space<vmem>>, %arg6: memref<16x128xf32, #tpu.memory_space<vmem>>) attributes {dimension_semantics = [#tpu.dimension_semantics<arbitrary>], iteration_bounds = array<i64: 1>, scalar_prefetch = 0 : i64, scratch_operands = 0 : i64, tpu.core_type = #tpu.core_type<tc>, window_params = [{pipeline_mode = #tpu.pipeline_mode<synchronous>, transform_indices = @transform_0, window_bounds = array<i64: 512, 32>}, {pipeline_mode = #tpu.pipeline_mode<synchronous>, transform_indices = @transform_1, window_bounds = array<i64: 32, 32>}, {pipeline_mode = #tpu.pipeline_mode<synchronous>, transform_indices = @transform_2, window_bounds = array<i64: 16, 512>}, {pipeline_mode = #tpu.pipeline_mode<synchronous>, transform_indices = @transform_3, window_bounds = array<i64: 32, 128>}, {pipeline_mode = #tpu.pipeline_mode<synchronous>, transform_indices = @transform_4, window_bounds = array<i64: 1, 128>}, {pipeline_mode = #tpu.pipeline_mode<synchronous>, transform_indices = @transform_5, window_bounds = array<i64: 16, 128>}]} {
    %c0 = arith.constant 0 : index
    %c0_0 = arith.constant 0 : index
    %0 = vector.load %arg1[%c0, %c0_0] : memref<512x32xf32, #tpu.memory_space<vmem>>, vector<512x32xf32>
    %c0_1 = arith.constant 0 : index
    %c0_2 = arith.constant 0 : index
    %1 = vector.load %arg2[%c0_1, %c0_2] : memref<32x32xf32, #tpu.memory_space<vmem>>, vector<32x32xf32>
    %cst = arith.constant dense<0.000000e+00> : vector<512x32xf32>
    %2 = tpu.matmul %0, %1, %cst {dimension_numbers = #tpu.dot_dimension_numbers<[1], [0], [0], [1], [0, 0, 1, 1], [], []>} : vector<512x32xf32>, vector<32x32xf32>, vector<512x32xf32> -> vector<512x32xf32>
    %cst_3 = arith.constant 0.000000e+00 : f32
    %3 = vector.broadcast %cst_3 : f32 to vector<512x32xf32>
    %4 = arith.maximumf %2, %3 : vector<512x32xf32>
    %c0_4 = arith.constant 0 : index
    %c0_5 = arith.constant 0 : index
    %5 = vector.load %arg3[%c0_4, %c0_5] : memref<16x512xf32, #tpu.memory_space<vmem>>, vector<16x512xf32>
    %cst_6 = arith.constant dense<0.000000e+00> : vector<16x32xf32>
    %6 = tpu.matmul %5, %4, %cst_6 {dimension_numbers = #tpu.dot_dimension_numbers<[1], [0], [0], [1], [0, 0, 1, 1], [], []>} : vector<16x512xf32>, vector<512x32xf32>, vector<16x32xf32> -> vector<16x32xf32>
    %c0_7 = arith.constant 0 : index
    %c0_8 = arith.constant 0 : index
    %7 = vector.load %arg4[%c0_7, %c0_8] : memref<32x128xf32, #tpu.memory_space<vmem>>, vector<32x128xf32>
    %cst_9 = arith.constant dense<0.000000e+00> : vector<16x128xf32>
    %8 = tpu.matmul %6, %7, %cst_9 {dimension_numbers = #tpu.dot_dimension_numbers<[1], [0], [0], [1], [0, 0, 1, 1], [], []>} : vector<16x32xf32>, vector<32x128xf32>, vector<16x128xf32> -> vector<16x128xf32>
    %c0_10 = arith.constant 0 : index
    %c0_11 = arith.constant 0 : index
    %9 = vector.load %arg5[%c0_10, %c0_11] : memref<1x128xf32, #tpu.memory_space<vmem>>, vector<1x128xf32>
    %10 = vector.broadcast %9 : vector<1x128xf32> to vector<16x128xf32>
    %11 = arith.addf %8, %10 : vector<16x128xf32>
    %cst_12 = arith.constant 0.000000e+00 : f32
    %12 = vector.broadcast %cst_12 : f32 to vector<16x128xf32>
    %13 = arith.maximumf %11, %12 : vector<16x128xf32>
    %c0_13 = arith.constant 0 : index
    %c0_14 = arith.constant 0 : index
    %14 = vector.load %arg6[%c0_13, %c0_14] : memref<16x128xf32, #tpu.memory_space<vmem>>, vector<16x128xf32>
    tpu.vector_store %arg6[%c0_13, %c0_14], %13 {strides = array<i32>} : memref<16x128xf32, #tpu.memory_space<vmem>>, vector<16x128xf32>,
    return
  }
  func.func @transform_0(%arg0: i32) -> (i32, i32) {
    %c0_i32 = arith.constant 0 : i32
    %c0_i32_0 = arith.constant 0 : i32
    %c0_i32_1 = arith.constant 0 : i32
    return %c0_i32, %c0_i32_0 : i32, i32
  }
  func.func @transform_1(%arg0: i32) -> (i32, i32) {
    %c0_i32 = arith.constant 0 : i32
    %c0_i32_0 = arith.constant 0 : i32
    %c0_i32_1 = arith.constant 0 : i32
    return %c0_i32, %c0_i32_0 : i32, i32
  }
  func.func @transform_2(%arg0: i32) -> (i32, i32) {
    %c0_i32 = arith.constant 0 : i32
    %c0_i32_0 = arith.constant 0 : i32
    %c0_i32_1 = arith.constant 0 : i32
    return %c0_i32, %c0_i32_0 : i32, i32
  }
  func.func @transform_3(%arg0: i32) -> (i32, i32) {
    %c0_i32 = arith.constant 0 : i32
    %c0_i32_0 = arith.constant 0 : i32
    %c0_i32_1 = arith.constant 0 : i32
    return %c0_i32, %c0_i32_0 : i32, i32
  }
  func.func @transform_4(%arg0: i32) -> (i32, i32) {
    %c0_i32 = arith.constant 0 : i32
    %c0_i32_0 = arith.constant 0 : i32
    %c0_i32_1 = arith.constant 0 : i32
    return %c0_i32, %c0_i32_0 : i32, i32
  }
  func.func @transform_5(%arg0: i32) -> (i32, i32) {
    %c0_i32 = arith.constant 0 : i32
    %c0_i32_0 = arith.constant 0 : i32
    %c0_i32_1 = arith.constant 0 : i32
    return %c0_i32, %c0_i32_0 : i32, i32
  }
}

</mosaic_0001>

<bundles_post_ra>
// kernel: _extract_features.1
= control target key start
LH: loop header
LB: loop body
LE: loop exit
PB: predicated region body
PF: predicated region fallthrough
CT: control target
= control target key end

     0   :  { %vm89_vm0 = vcmask 261120   ;;  %s1852_s0 = inlined_call_operand.vmem [shape: f32[512,32], index: 0, kind: input, shape index: {}]   ;;  %s1853_s1 = inlined_call_operand.vmem [shape: f32[32,32], index: 1, kind: input, shape index: {}]   ;;  %s1854_s2 = inlined_call_operand.vmem [shape: f32[16,512], index: 2, kind: input, shape index: {}]   ;;  %s1855_s3 = inlined_call_operand.vmem [shape: f32[32,128], index: 3, kind: input, shape index: {}]   ;;  %s1856_s4 = inlined_call_operand.vmem [shape: f32[1,128], index: 4, kind: input, shape index: {}]   ;;  %s1857_s5 = inlined_call_operand.hbm [shape: f32[16,128], index: 5, kind: output, shape index: {}]  }
   0x1   :  { %v85_v0 = vld [vmem:[%s1853_s1] sm:$0xff]  ;;  %v86_v1 = vld [vmem:[%s1853_s1 + $0x8] sm:$0xff]  ;;  %v87_v2 = vld [vmem:[%s1853_s1 + $0x10] sm:$0xff] }
   0x2   :  { %v1333_v3 = vpack.c.bf16 %v86_v1, %v85_v0  ;;  %v88_v4 = vld [vmem:[%s1853_s1 + $0x18] sm:$0xff]  ;;  %v21_v5 = vld [vmem:[%s1852_s0] sm:$0xff]  ;;  %v22_v7 = vld [vmem:[%s1852_s0 + $0x8] sm:$0xff] }
   0x3   :  { %v1337_v6 = vpack.c.bf16 %v88_v4, %v87_v2  ;;  %1226 = vmatprep.mubr.msk.f32.mxu0 %vm89_vm0, %v21_v5  ;;  %v23_v8 = vld [vmem:[%s1852_s0 + $0x10] sm:$0xff]  ;;  %v65_v9 = vld [vmem:[%s1852_s0 + $0x160] sm:$0xff]  ;;  %v66_v10 = vld [vmem:[%s1852_s0 + $0x168] sm:$0xff] }
   0x4   :  { %1334 = vmatprep.subr.bf16.mxu0 %v1333_v3  ;;  %1413 = vmatprep.subr.bf16.mxu1 %v1333_v3  ;;  %v24_v11 = vld [vmem:[%s1852_s0 + $0x18] sm:$0xff]  ;;  %v67_v12 = vld [vmem:[%s1852_s0 + $0x170] sm:$0xff]  ;;  %v25_v13 = vld [vmem:[%s1852_s0 + $0x20] sm:$0xff] }
   0x5   :  { %1336 = vmatpush3.bf16.msra.mxu0 %v1333_v3  ;;  %1415 = vmatpush3.bf16.msra.mxu1 %v1333_v3  ;;  %v68_v14 = vld [vmem:[%s1852_s0 + $0x178] sm:$0xff]  ;;  %v69_v15 = vld [vmem:[%s1852_s0 + $0x180] sm:$0xff]  ;;  %v26_v16 = vld [vmem:[%s1852_s0 + $0x28] sm:$0xff] }
   0x6   :  { %1338 = vmatprep.subr.bf16.mxu0 %v1337_v6  ;;  %1414 = vmatprep.subr.bf16.mxu1 %v1337_v6  ;;  %v27_v17 = vld [vmem:[%s1852_s0 + $0x30] sm:$0xff]  ;;  %v70_v18 = vld [vmem:[%s1852_s0 + $0x188] sm:$0xff]  ;;  %v28_v20 = vld [vmem:[%s1852_s0 + $0x38] sm:$0xff] }
   0x7   :  { %1292 = vmatprep.mubr.msk.f32.mxu1 %vm89_vm0, %v65_v9  ;;  %v71_v19 = vld [vmem:[%s1852_s0 + $0x190] sm:$0xff]  ;;  %v29_v21 = vld [vmem:[%s1852_s0 + $0x40] sm:$0xff]  ;;  %v72_v22 = vld [vmem:[%s1852_s0 + $0x198] sm:$0xff] }
   0x9   :  { %1340 = vmatpush3.bf16.msra.mxu0 %v1337_v6  ;;  %1416 = vmatpush3.bf16.msra.mxu1 %v1337_v6 }
   0xc   :  { %1227 = vmatmul.mubr.msk.f32.vlgmr.msra.gmra.mrb[0].mxu0 %vm89_vm0, %v22_v7  ;;  %1293 = vmatmul.mubr.msk.f32.vlgmr.msra.gmra.mrb[0].mxu1 %vm89_vm0, %v66_v10 }
   0xd   :  { %1229 = vmatprep.mubr.msk.f32.mxu0 %vm89_vm0, %v23_v8  ;;  %1295 = vmatprep.mubr.msk.f32.mxu1 %vm89_vm0, %v67_v12 }
  0x10   :  { %1230 = vmatmul.mubr.msk.f32.gmra.mrb[2].mxu0 %vm89_vm0, %v24_v11  ;;  %1296 = vmatmul.mubr.msk.f32.gmra.mrb[2].mxu1 %vm89_vm0, %v68_v14 }
  0x11   :  { %1232 = vmatprep.mubr.msk.f32.mxu0 %vm89_vm0, %v25_v13  ;;  %1298 = vmatprep.mubr.msk.f32.mxu1 %vm89_vm0, %v69_v15 }
  0x14   :  { %1233 = vmatmul.mubr.msk.f32.gmra.mrb[4].mxu0 %vm89_vm0, %v26_v16  ;;  %1299 = vmatmul.mubr.msk.f32.gmra.mrb[4].mxu1 %vm89_vm0, %v70_v18 }
  0x15   :  { %1235 = vmatprep.mubr.msk.f32.mxu0 %vm89_vm0, %v27_v17  ;;  %1301 = vmatprep.mubr.msk.f32.mxu1 %vm89_vm0, %v71_v19 }
  0x16   :  { %10 = vsyncpa [#allocation3], 0  ;;  %v73_v23 = vld [vmem:[%s1852_s0 + $0x1a0] sm:$0xff]  ;;  %v30_v24 = vld [vmem:[%s1852_s0 + $0x48] sm:$0xff]  ;;  %s1444_s21 = smov [#allocation2]  }
  0x17   :  { %v31_v25 = vld [vmem:[%s1852_s0 + $0x50] sm:$0xff]  ;;  %v74_v26 = vld [vmem:[%s1852_s0 + $0x1a8] sm:$0xff]  ;;  %v32_v28 = vld [vmem:[%s1852_s0 + $0x58] sm:$0xff]  ;;  %s990_s22 = sshll.u32 %s1444_s21, 4  ;;  %s991_s22 = int_to_ptr.vmem [resolvable:$true] %s990_s22 }
  0x18   :  { %1236 = vmatmul.mubr.msk.f32.gmra.mrb[6].mxu0 %vm89_vm0, %v28_v20  ;;  %1302 = vmatmul.mubr.msk.f32.gmra.mrb[6].mxu1 %vm89_vm0, %v72_v22  ;;  %v75_v27 = vld [vmem:[%s1852_s0 + $0x1b0] sm:$0xff]  ;;  %v33_v29 = vld [vmem:[%s1852_s0 + $0x60] sm:$0xff]  ;;  %v76_v30 = vld [vmem:[%s1852_s0 + $0x1b8] sm:$0xff]  ;;  %s1420_s23 = scalar_lea.vmem %s991_s22, 256  ;;  %p1425_p1 = scmp.lt.s32.totalorder %s991_s22, %s991_s22 }
  0x19   :  { %1238 = vmatprep.mubr.msk.f32.mxu0 %vm89_vm0, %v29_v21  ;;  %1304 = vmatprep.mubr.msk.f32.mxu1 %vm89_vm0, %v73_v23  ;;  %v77_v31 = vld [vmem:[%s1852_s0 + $0x1c0] sm:$0xff]  ;;  %v34_v32 = vld [vmem:[%s1852_s0 + $0x68] sm:$0xff]  ;;  %v35_v33 = vld [vmem:[%s1852_s0 + $0x70] sm:$0xff]  ;;  %p1421_p0 = scmp.ne.s32.totalorder %s991_s22, %s1420_s23  ;;  %p1426_p2 = scmp.lt.s32.totalorder %s1420_s23, %s1420_s23 }
  0x1a   :  { %v78_v34 = vld [vmem:[%s1852_s0 + $0x1c8] sm:$0xff]  ;;  %v79_v35 = vld [vmem:[%s1852_s0 + $0x1d0] sm:$0xff]  ;;  %v36_v36 = vld [vmem:[%s1852_s0 + $0x78] sm:$0xff] }
  0x1b   :  { %v37_v37 = vld [vmem:[%s1852_s0 + $0x80] sm:$0xff]  ;;  %v80_v38 = vld [vmem:[%s1852_s0 + $0x1d8] sm:$0xff]  ;;  %v38_v40 = vld [vmem:[%s1852_s0 + $0x88] sm:$0xff]  ;;  %p1427_p3 = por %p1426_p2, %p1425_p1 }
  0x1c   :  { %1239 = vmatmul.mubr.msk.f32.gmra.mrb[8].mxu0 %vm89_vm0, %v30_v24  ;;  %1305 = vmatmul.mubr.msk.f32.gmra.mrb[8].mxu1 %vm89_vm0, %v74_v26  ;;  %v81_v39 = vld [vmem:[%s1852_s0 + $0x1e0] sm:$0xff]  ;;  %v39_v41 = vld [vmem:[%s1852_s0 + $0x90] sm:$0xff]  ;;  %v82_v42 = vld [vmem:[%s1852_s0 + $0x1e8] sm:$0xff] }
  0x1d   :  { %1241 = vmatprep.mubr.msk.f32.mxu0 %vm89_vm0, %v31_v25  ;;  %1307 = vmatprep.mubr.msk.f32.mxu1 %vm89_vm0, %v75_v27  ;;  %v83_v43 = vld [vmem:[%s1852_s0 + $0x1f0] sm:$0xff]  ;;  %v40_v44 = vld [vmem:[%s1852_s0 + $0x98] sm:$0xff]  ;;  %v41_v45 = vld [vmem:[%s1852_s0 + $0xa0] sm:$0xff]  ;;  %p1428_p4 = pnand %p1427_p3, %p1421_p0 }
  0x1e   :  { %v84_v46 = vld [vmem:[%s1852_s0 + $0x1f8] sm:$0xff]  ;;  %v42_v47 = vld [vmem:[%s1852_s0 + $0xa8] sm:$0xff]  ;;  %v43_v48 = vld [vmem:[%s1852_s0 + $0xb0] sm:$0xff] }
  0x1f   :  { %v44_v49 = vld [vmem:[%s1852_s0 + $0xb8] sm:$0xff]  ;;  %v45_v50 = vld [vmem:[%s1852_s0 + $0xc0] sm:$0xff]  ;;  %v46_v51 = vld [vmem:[%s1852_s0 + $0xc8] sm:$0xff] }
  0x20   :  { %1242 = vmatmul.mubr.msk.f32.gmra.mrb[10].mxu0 %vm89_vm0, %v32_v28  ;;  %1308 = vmatmul.mubr.msk.f32.gmra.mrb[10].mxu1 %vm89_vm0, %v76_v30  ;;  %v47_v52 = vld [vmem:[%s1852_s0 + $0xd0] sm:$0xff]  ;;  %v48_v53 = vld [vmem:[%s1852_s0 + $0xd8] sm:$0xff]  ;;  %v49_v54 = vld [vmem:[%s1852_s0 + $0xe0] sm:$0xff] }
  0x21   :  { %1244 = vmatprep.mubr.msk.f32.mxu0 %vm89_vm0, %v33_v29  ;;  %1310 = vmatprep.mubr.msk.f32.mxu1 %vm89_vm0, %v77_v31  ;;  %v50_v55 = vld [vmem:[%s1852_s0 + $0xe8] sm:$0xff]  ;;  %v51_v56 = vld [vmem:[%s1852_s0 + $0xf0] sm:$0xff]  ;;  %v52_v57 = vld [vmem:[%s1852_s0 + $0xf8] sm:$0xff] }
  0x22   :  { %v53_v58 = vld [vmem:[%s1852_s0 + $0x100] sm:$0xff]  ;;  %v54_v59 = vld [vmem:[%s1852_s0 + $0x108] sm:$0xff]  ;;  %v55_v60 = vld [vmem:[%s1852_s0 + $0x110] sm:$0xff] }
  0x23   :  { %v56_v61 = vld [vmem:[%s1852_s0 + $0x118] sm:$0xff]  ;;  %v57_v62 = vld [vmem:[%s1852_s0 + $0x120] sm:$0xff]  ;;  %v58_v63 = vld [vmem:[%s1852_s0 + $0x128] sm:$0xff] }
  0x24   :  { %1245 = vmatmul.mubr.msk.f32.gmra.mrb[12].mxu0 %vm89_vm0, %v34_v32  ;;  %1311 = vmatmul.mubr.msk.f32.gmra.mrb[12].mxu1 %vm89_vm0, %v78_v34  ;;  %v59_v0 = vld [vmem:[%s1852_s0 + $0x130] sm:$0xff]  ;;  %v60_v1 = vld [vmem:[%s1852_s0 + $0x138] sm:$0xff]  ;;  %v61_v2 = vld [vmem:[%s1852_s0 + $0x140] sm:$0xff] }
  0x25   :  { %1247 = vmatprep.mubr.msk.f32.mxu0 %vm89_vm0, %v35_v33  ;;  %1313 = vmatprep.mubr.msk.f32.mxu1 %vm89_vm0, %v79_v35  ;;  %v62_v3 = vld [vmem:[%s1852_s0 + $0x148] sm:$0xff]  ;;  %v63_v4 = vld [vmem:[%s1852_s0 + $0x150] sm:$0xff]  ;;  %v64_v5 = vld [vmem:[%s1852_s0 + $0x158] sm:$0xff] }
  0x26   :  { %v732_v6 = vld [vmem:[%s1854_s2 + $0x8] sm:$0xff] }
  0x28   :  { %1248 = vmatmul.mubr.msk.f32.gmra.mrb[14].mxu0 %vm89_vm0, %v36_v36  ;;  %1314 = vmatmul.mubr.msk.f32.gmra.mrb[14].mxu1 %vm89_vm0, %v80_v38 }
  0x29   :  { %1250 = vmatprep.mubr.msk.f32.mxu0 %vm89_vm0, %v37_v37  ;;  %1316 = vmatprep.mubr.msk.f32.mxu1 %vm89_vm0, %v81_v39 }
  0x2c   :  { %1251 = vmatmul.mubr.msk.f32.gmra.mrb[16].mxu0 %vm89_vm0, %v38_v40  ;;  %1317 = vmatmul.mubr.msk.f32.gmra.mrb[16].mxu1 %vm89_vm0, %v82_v42 }
  0x2d   :  { %1253 = vmatprep.mubr.msk.f32.mxu0 %vm89_vm0, %v39_v41  ;;  %1319 = vmatprep.mubr.msk.f32.mxu1 %vm89_vm0, %v83_v43 }
  0x30   :  { %1254 = vmatmul.mubr.msk.f32.gmra.mrb[18].mxu0 %vm89_vm0, %v40_v44  ;;  %1320 = vmatmul.mubr.msk.f32.gmra.mrb[18].mxu1 %vm89_vm0, %v84_v46 }
  0x31   :  { %1256 = vmatprep.mubr.msk.f32.mxu0 %vm89_vm0, %v41_v45  ;;  %803 = vmatprep.mubr.f32.mxu1 %v732_v6 }
  0x34   :  { %1257 = vmatmul.mubr.msk.f32.gmra.mrb[20].mxu0 %vm89_vm0, %v42_v47 }
  0x35   :  { %1259 = vmatprep.mubr.msk.f32.mxu0 %vm89_vm0, %v43_v48 }
  0x38   :  { %1260 = vmatmul.mubr.msk.f32.gmra.mrb[22].mxu0 %vm89_vm0, %v44_v49 }
  0x39   :  { %1262 = vmatprep.mubr.msk.f32.mxu0 %vm89_vm0, %v45_v50 }
  0x3c   :  { %1263 = vmatmul.mubr.msk.f32.gmra.mrb[24].mxu0 %vm89_vm0, %v46_v51 }
  0x3d   :  { %1265 = vmatprep.mubr.msk.f32.mxu0 %vm89_vm0, %v47_v52 }
  0x40   :  { %1266 = vmatmul.mubr.msk.f32.gmra.mrb[26].mxu0 %vm89_vm0, %v48_v53 }
  0x41   :  { %1268 = vmatprep.mubr.msk.f32.mxu0 %vm89_vm0, %v49_v54 }
  0x44   :  { %1269 = vmatmul.mubr.msk.f32.gmra.mrb[28].mxu0 %vm89_vm0, %v50_v55 }
  0x45   :  { %1271 = vmatprep.mubr.msk.f32.mxu0 %vm89_vm0, %v51_v56 }
  0x48   :  { %1272 = vmatmul.mubr.msk.f32.gmra.mrb[30].mxu0 %vm89_vm0, %v52_v57 }
  0x49   :  { %1274 = vmatprep.mubr.msk.f32.mxu0 %vm89_vm0, %v53_v58 }
  0x4c   :  { %1275 = vmatmul.mubr.msk.f32.gmra.mrb[32].mxu0 %vm89_vm0, %v54_v59 }
  0x4d   :  { %1277 = vmatprep.mubr.msk.f32.mxu0 %vm89_vm0, %v55_v60 }
  0x50   :  { %1278 = vmatmul.mubr.msk.f32.gmra.mrb[34].mxu0 %vm89_vm0, %v56_v61 }
  0x51   :  { %1280 = vmatprep.mubr.msk.f32.mxu0 %vm89_vm0, %v57_v62 }
  0x54   :  { %1281 = vmatmul.mubr.msk.f32.gmra.mrb[36].mxu0 %vm89_vm0, %v58_v63 }
  0x55   :  { %1283 = vmatprep.mubr.msk.f32.mxu0 %vm89_vm0, %v59_v0 }
  0x58   :  { %1284 = vmatmul.mubr.msk.f32.gmra.mrb[38].mxu0 %vm89_vm0, %v60_v1 }
  0x59   :  { %1286 = vmatprep.mubr.msk.f32.mxu0 %vm89_vm0, %v61_v2 }
  0x5c   :  { %1287 = vmatmul.mubr.msk.f32.gmra.mrb[40].mxu0 %vm89_vm0, %v62_v3 }
  0x5d   :  { %1289 = vmatprep.mubr.msk.f32.mxu0 %vm89_vm0, %v63_v4 }
  0x60   :  { %1290 = vmatmul.mubr.msk.f32.gmra.mrb[42].mxu0 %vm89_vm0, %v64_v5 }
  0xdf   :  { %v1228_v7 = vpop.f32.mrb[0].mxu0  ;;  %v1294_v11 = vpop.f32.mrb[0].mxu1 }
  0xe0   :  { %v668_v8 = vmax.f32 %v1228_v7, 0.0  ;;  %v348_v9 = vpop.f32.mrb[1].mxu0  ;;  %v712_v12 = vmax.f32 %v1294_v11, 0.0  ;;  %v568_v13 = vpop.f32.mrb[1].mxu1 }
  0xe1   :  { %v667_v10 = vmax.f32 %v348_v9, 0.0  ;;  %v711_v16 = vmax.f32 %v568_v13, 0.0 }
  0xe3   :  { %v1748_v14 = vpack.c.bf16 %v668_v8, %v667_v10  ;;  %v1231_v15 = vpop.f32.mrb[2].mxu0  ;;  %v1750_v20 = vpack.c.bf16 %v712_v12, %v711_v16  ;;  %v1297_v21 = vpop.f32.mrb[2].mxu1 }
  0xe4   :  { %v670_v17 = vmax.f32 %v1231_v15, 0.0  ;;  %v358_v18 = vpop.f32.mrb[3].mxu0  ;;  %v714_v22 = vmax.f32 %v1297_v21, 0.0  ;;  %v578_v23 = vpop.f32.mrb[3].mxu1 }
  0xe5   :  { %v669_v19 = vmax.f32 %v358_v18, 0.0  ;;  %v713_v26 = vmax.f32 %v578_v23, 0.0 }
  0xe7   :  { %v1752_v24 = vpack.c.bf16 %v670_v17, %v669_v19  ;;  %v1234_v25 = vpop.f32.mrb[4].mxu0  ;;  %v1754_v30 = vpack.c.bf16 %v714_v22, %v713_v26  ;;  %v1300_v31 = vpop.f32.mrb[4].mxu1 }
  0xe8   :  { %v672_v27 = vmax.f32 %v1234_v25, 0.0  ;;  %v368_v28 = vpop.f32.mrb[5].mxu0  ;;  %v716_v32 = vmax.f32 %v1300_v31, 0.0  ;;  %v588_v33 = vpop.f32.mrb[5].mxu1 }
  0xe9   :  { %v671_v29 = vmax.f32 %v368_v28, 0.0  ;;  %v715_v36 = vmax.f32 %v588_v33, 0.0 }
  0xeb   :  { %v1756_v34 = vpack.c.bf16 %v672_v27, %v671_v29  ;;  %v1237_v35 = vpop.f32.mrb[6].mxu0  ;;  %v1758_v40 = vpack.c.bf16 %v716_v32, %v715_v36  ;;  %v1303_v41 = vpop.f32.mrb[6].mxu1 }
  0xec   :  { %v674_v37 = vmax.f32 %v1237_v35, 0.0  ;;  %v378_v38 = vpop.f32.mrb[7].mxu0  ;;  %v718_v42 = vmax.f32 %v1303_v41, 0.0  ;;  %v598_v43 = vpop.f32.mrb[7].mxu1 }
  0xed   :  { %v673_v39 = vmax.f32 %v378_v38, 0.0  ;;  %v717_v46 = vmax.f32 %v598_v43, 0.0 }
  0xef   :  { %v1760_v44 = vpack.c.bf16 %v674_v37, %v673_v39  ;;  %v1240_v45 = vpop.f32.mrb[8].mxu0  ;;  %v1762_v50 = vpack.c.bf16 %v718_v42, %v717_v46  ;;  %v1306_v51 = vpop.f32.mrb[8].mxu1 }
  0xf0   :  { %v676_v47 = vmax.f32 %v1240_v45, 0.0  ;;  %v388_v48 = vpop.f32.mrb[9].mxu0  ;;  %v720_v52 = vmax.f32 %v1306_v51, 0.0  ;;  %v608_v53 = vpop.f32.mrb[9].mxu1 }
  0xf1   :  { %v675_v49 = vmax.f32 %v388_v48, 0.0  ;;  %v719_v56 = vmax.f32 %v608_v53, 0.0 }
  0xf3   :  { %v1764_v54 = vpack.c.bf16 %v676_v47, %v675_v49  ;;  %v1243_v55 = vpop.f32.mrb[10].mxu0  ;;  %v1766_v60 = vpack.c.bf16 %v720_v52, %v719_v56  ;;  %v1309_v61 = vpop.f32.mrb[10].mxu1 }
  0xf4   :  { %v678_v57 = vmax.f32 %v1243_v55, 0.0  ;;  %v398_v58 = vpop.f32.mrb[11].mxu0  ;;  %v722_v62 = vmax.f32 %v1309_v61, 0.0  ;;  %v618_v63 = vpop.f32.mrb[11].mxu1 }
  0xf5   :  { %v677_v59 = vmax.f32 %v398_v58, 0.0  ;;  %v721_v2 = vmax.f32 %v618_v63, 0.0 }
  0xf7   :  { %v1768_v0 = vpack.c.bf16 %v678_v57, %v677_v59  ;;  %v1246_v1 = vpop.f32.mrb[12].mxu0  ;;  %v1770_v6 = vpack.c.bf16 %v722_v62, %v721_v2  ;;  %v1312_v7 = vpop.f32.mrb[12].mxu1 }
  0xf8   :  { %v680_v3 = vmax.f32 %v1246_v1, 0.0  ;;  %v408_v4 = vpop.f32.mrb[13].mxu0  ;;  %v724_v8 = vmax.f32 %v1312_v7, 0.0  ;;  %v628_v9 = vpop.f32.mrb[13].mxu1 }
  0xf9   :  { %v679_v5 = vmax.f32 %v408_v4, 0.0  ;;  %v723_v12 = vmax.f32 %v628_v9, 0.0 }
  0xfb   :  { %v1772_v10 = vpack.c.bf16 %v680_v3, %v679_v5  ;;  %v1249_v11 = vpop.f32.mrb[14].mxu0  ;;  %v1774_v17 = vpack.c.bf16 %v724_v8, %v723_v12  ;;  %v1315_v18 = vpop.f32.mrb[14].mxu1 }
  0xfc   :  { %v682_v13 = vmax.f32 %v1249_v11, 0.0  ;;  %v418_v15 = vpop.f32.mrb[15].mxu0  ;;  %v726_v19 = vmax.f32 %v1315_v18, 0.0  ;;  %v638_v21 = vpop.f32.mrb[15].mxu1 }
  0xfd   :  { %v681_v16 = vmax.f32 %v418_v15, 0.0  ;;  %v725_v25 = vmax.f32 %v638_v21, 0.0 }
  0xff   :  { %v1776_v22 = vpack.c.bf16 %v682_v13, %v681_v16  ;;  %v1252_v23 = vpop.f32.mrb[16].mxu0  ;;  %v1778_v29 = vpack.c.bf16 %v726_v19, %v725_v25  ;;  %v1318_v31 = vpop.f32.mrb[16].mxu1 }
 0x100   :  { %v684_v26 = vmax.f32 %v1252_v23, 0.0  ;;  %v428_v27 = vpop.f32.mrb[17].mxu0  ;;  %v728_v32 = vmax.f32 %v1318_v31, 0.0  ;;  %v648_v33 = vpop.f32.mrb[17].mxu1 }
 0x101   :  { %v683_v28 = vmax.f32 %v428_v27, 0.0  ;;  %v727_v37 = vmax.f32 %v648_v33, 0.0 }
 0x103   :  { %v1341_v35 = vpack.c.bf16 %v684_v26, %v683_v28  ;;  %v1255_v36 = vpop.f32.mrb[18].mxu0  ;;  %v1780_v42 = vpack.c.bf16 %v728_v32, %v727_v37  ;;  %v1321_v43 = vpop.f32.mrb[18].mxu1 }
 0x104   :  { %v686_v38 = vmax.f32 %v1255_v36, 0.0  ;;  %v438_v39 = vpop.f32.mrb[19].mxu0  ;;  %v730_v45 = vmax.f32 %v1321_v43, 0.0  ;;  %v658_v46 = vpop.f32.mrb[19].mxu1 }
 0x105   :  { %v685_v41 = vmax.f32 %v438_v39, 0.0  ;;  %1342 = vmatprep.subr.bf16.mxu1 %v1341_v35  ;;  %v729_v49 = vmax.f32 %v658_v46, 0.0 }
 0x106   :  { %1344 = vmatpush3.bf16.msra.mxu1 %v1748_v14 }
 0x107   :  { %v1345_v47 = vpack.c.bf16 %v686_v38, %v685_v41  ;;  %v1258_v48 = vpop.f32.mrb[20].mxu0  ;;  %v1783_v55 = vpack.c.bf16 %v730_v45, %v729_v49 }
 0x108   :  { %v688_v51 = vmax.f32 %v1258_v48, 0.0  ;;  %v448_v52 = vpop.f32.mrb[21].mxu0 }
 0x109   :  { %v687_v53 = vmax.f32 %v448_v52, 0.0  ;;  %1346 = vmatprep.subr.bf16.mxu1 %v1345_v47 }
 0x10a   :  { %1348 = vmatpush3.bf16.msra.mxu1 %v1752_v24 }
 0x10b   :  { %v1349_v56 = vpack.c.bf16 %v688_v51, %v687_v53  ;;  %v1261_v57 = vpop.f32.mrb[22].mxu0 }
 0x10c   :  { %v690_v58 = vmax.f32 %v1261_v57, 0.0  ;;  %v458_v59 = vpop.f32.mrb[23].mxu0 }
 0x10d   :  { %v689_v61 = vmax.f32 %v458_v59, 0.0  ;;  %1350 = vmatprep.subr.bf16.mxu1 %v1349_v56  ;;  %v892_v59 = vld [vmem:[%s1855_s3 + $0x18] sm:$0xff] }
 0x10e   :  { %1352 = vmatpush3.bf16.msra.mxu1 %v1756_v34 }
 0x10f   :  { %v1353_v14 = vpack.c.bf16 %v690_v58, %v689_v61  ;;  %v1264_v62 = vpop.f32.mrb[24].mxu0 }
 0x110   :  { %v692_v63 = vmax.f32 %v1264_v62, 0.0  ;;  %v468_v1 = vpop.f32.mrb[25].mxu0 }
 0x111   :  { %v691_v2 = vmax.f32 %v468_v1, 0.0  ;;  %1354 = vmatprep.subr.bf16.mxu1 %v1353_v14 }
 0x112   :  { %1356 = vmatpush3.bf16.msra.mxu1 %v1760_v44 }
 0x113   :  { %v1357_v3 = vpack.c.bf16 %v692_v63, %v691_v2  ;;  %v1267_v4 = vpop.f32.mrb[26].mxu0 }
 0x114   :  { %v694_v5 = vmax.f32 %v1267_v4, 0.0  ;;  %v478_v24 = vpop.f32.mrb[27].mxu0 }
 0x115   :  { %v693_v7 = vmax.f32 %v478_v24, 0.0  ;;  %1358 = vmatprep.subr.bf16.mxu1 %v1357_v3 }
 0x116   :  { %1360 = vmatpush3.bf16.msra.mxu1 %v1764_v54 }
 0x117   :  { %v1361_v8 = vpack.c.bf16 %v694_v5, %v693_v7  ;;  %v1270_v9 = vpop.f32.mrb[28].mxu0 }
 0x118   :  { %v696_v11 = vmax.f32 %v1270_v9, 0.0  ;;  %v488_v34 = vpop.f32.mrb[29].mxu0 }
 0x119   :  { %v695_v12 = vmax.f32 %v488_v34, 0.0  ;;  %1362 = vmatprep.subr.bf16.mxu1 %v1361_v8 }
 0x11a   :  { %1364 = vmatpush3.bf16.msra.mxu1 %v1768_v0  ;;  %v731_v0 = vld [vmem:[%s1854_s2] sm:$0xff] }
 0x11b   :  { %v1365_v13 = vpack.c.bf16 %v696_v11, %v695_v12  ;;  %v1273_v15 = vpop.f32.mrb[30].mxu0  ;;  %v1065_v12 = vld [vmem:[%s1856_s4] ss:$0 sm:$0xff] }
 0x11c   :  { %v698_v16 = vmax.f32 %v1273_v15, 0.0  ;;  %v498_v44 = vpop.f32.mrb[31].mxu0 }
 0x11d   :  { %v697_v18 = vmax.f32 %v498_v44, 0.0  ;;  %1366 = vmatprep.subr.bf16.mxu1 %v1365_v13 }
 0x11e   :  { %1368 = vmatpush3.bf16.msra.mxu1 %v1772_v10  ;;  %v736_v10 = vld [vmem:[%s1854_s2 + $0x28] sm:$0xff] }
 0x11f   :  { %v1369_v19 = vpack.c.bf16 %v698_v16, %v697_v18  ;;  %v1276_v21 = vpop.f32.mrb[32].mxu0 }
 0x120   :  { %v700_v23 = vmax.f32 %v1276_v21, 0.0  ;;  %v508_v54 = vpop.f32.mrb[33].mxu0 }
 0x121   :  { %v699_v25 = vmax.f32 %v508_v54, 0.0  ;;  %1370 = vmatprep.subr.bf16.mxu1 %v1369_v19 }
 0x122   :  { %1372 = vmatpush3.bf16.msra.mxu1 %v1776_v22  ;;  %v735_v22 = vld [vmem:[%s1854_s2 + $0x20] sm:$0xff] }
 0x123   :  { %v1375_v26 = vpack.c.bf16 %v700_v23, %v699_v25  ;;  %v1279_v27 = vpop.f32.mrb[34].mxu0  ;;  %1374 = vmatprep.subr.bf16.mxu1 %v1758_v40  ;;  %v734_v40 = vld [vmem:[%s1854_s2 + $0x18] sm:$0xff] }
 0x124   :  { %v702_v28 = vmax.f32 %v1279_v27, 0.0  ;;  %v518_v31 = vpop.f32.mrb[35].mxu0 }
 0x125   :  { %v701_v32 = vmax.f32 %v518_v31, 0.0  ;;  %804 = vmatmul.mubr.f32.vlgmr.msra.gmra.mrb[20].mxu1 %v731_v0 }
 0x126   :  { %1376 = vmatpush3.bf16.msra.mxu1 %v1375_v26  ;;  %808 = vmatprep.mubr.f32.mxu1 %v736_v10 }
 0x127   :  { %v1379_v33 = vpack.c.bf16 %v702_v28, %v701_v32  ;;  %v1282_v35 = vpop.f32.mrb[36].mxu0  ;;  %1378 = vmatprep.subr.bf16.mxu1 %v1762_v50 }
 0x128   :  { %v704_v36 = vmax.f32 %v1282_v35, 0.0  ;;  %v528_v37 = vpop.f32.mrb[37].mxu0 }
 0x129   :  { %v703_v38 = vmax.f32 %v528_v37, 0.0  ;;  %809 = vmatmul.mubr.f32.gmra.mrb[22].mxu1 %v735_v22 }
 0x12a   :  { %1380 = vmatpush3.bf16.msra.mxu1 %v1379_v33  ;;  %878 = vmatprep.mubr.f32.mxu1 %v734_v40 }
 0x12b   :  { %v1383_v39 = vpack.c.bf16 %v704_v36, %v703_v38  ;;  %v1285_v41 = vpop.f32.mrb[38].mxu0  ;;  %1382 = vmatprep.subr.bf16.mxu1 %v1766_v60 }
 0x12c   :  { %v706_v43 = vmax.f32 %v1285_v41, 0.0  ;;  %v538_v45 = vpop.f32.mrb[39].mxu0 }
 0x12d   :  { %v705_v46 = vmax.f32 %v538_v45, 0.0 }
 0x12e   :  { %1384 = vmatpush3.bf16.msra.mxu1 %v1383_v39 }
 0x12f   :  { %v1387_v47 = vpack.c.bf16 %v706_v43, %v705_v46  ;;  %v1288_v50 = vpop.f32.mrb[40].mxu0  ;;  %1386 = vmatprep.subr.bf16.mxu1 %v1770_v6  ;;  %v733_v6 = vld [vmem:[%s1854_s2 + $0x10] sm:$0xff] }
 0x130   :  { %v708_v48 = vmax.f32 %v1288_v50, 0.0  ;;  %v548_v49 = vpop.f32.mrb[41].mxu0 }
 0x131   :  { %v707_v51 = vmax.f32 %v548_v49, 0.0 }
 0x132   :  { %1388 = vmatpush3.bf16.msra.mxu1 %v1387_v47 }
 0x133   :  { %v1391_v52 = vpack.c.bf16 %v708_v48, %v707_v51  ;;  %v1291_v53 = vpop.f32.mrb[42].mxu0  ;;  %1390 = vmatprep.subr.bf16.mxu1 %v1774_v17  ;;  %v738_v17 = vld [vmem:[%s1854_s2 + $0x38] sm:$0xff] }
 0x134   :  { %v710_v56 = vmax.f32 %v1291_v53, 0.0  ;;  %v558_v57 = vpop.f32.mrb[43].mxu0 }
 0x135   :  { %v709_v58 = vmax.f32 %v558_v57, 0.0 }
 0x136   :  { %1392 = vmatpush3.bf16.msra.mxu1 %v1391_v52 }
 0x137   :  { %v1395_v60 = vpack.c.bf16 %v710_v56, %v709_v58  ;;  %1394 = vmatprep.subr.bf16.mxu1 %v1778_v29  ;;  %v737_v29 = vld [vmem:[%s1854_s2 + $0x30] sm:$0xff] }
 0x13a   :  { %1396 = vmatpush3.bf16.msra.mxu1 %v1395_v60 }
 0x13b   :  { %1398 = vmatprep.subr.bf16.mxu1 %v1780_v42 }
 0x13e   :  { %1400 = vmatpush3.bf16.msra.mxu1 %v1750_v20  ;;  %v889_v20 = vld [vmem:[%s1855_s3] sm:$0xff] }
 0x13f   :  { %1402 = vmatprep.subr.bf16.mxu1 %v1783_v55  ;;  %v891_v55 = vld [vmem:[%s1855_s3 + $0x10] sm:$0xff] }
 0x140   :  { %v1409_v61 = vpack.c.bf16 %v892_v59, %v891_v55 }
 0x142   :  { %1404 = vmatpush3.bf16.msra.mxu1 %v1754_v30  ;;  %v890_v30 = vld [vmem:[%s1855_s3 + $0x8] sm:$0xff] }
 0x143   :  { %v1405_v42 = vpack.c.bf16 %v890_v30, %v889_v20 }
 0x145   :  { %879 = vmatmul.mubr.f32.vlgmr.msra.gmra.mrb[24].mxu1 %v733_v6  ;;  %1406 = vmatprep.subr.bf16.mxu1 %v1405_v42 }
 0x146   :  { %883 = vmatprep.mubr.f32.mxu1 %v738_v17  ;;  %1408 = vmatpush3.bf16.msra.mxu1 %v1405_v42 }
 0x147   :  { %1410 = vmatprep.subr.bf16.mxu1 %v1409_v61 }
 0x149   :  { %884 = vmatmul.mubr.f32.gmra.mrb[26].mxu1 %v737_v29 }
 0x14a   :  { %1412 = vmatpush3.bf16.msra.mxu1 %v1409_v61 }
 0x1f8   :  { %v1168_v14 = vpop.f32.mrb[20].mxu1 }
 0x1f9   :  { %v1169_v62 = vpop.f32.mrb[21].mxu1 }
 0x1fa   :  { %v1170_v63 = vadd.f32 %v1169_v62, %v1168_v14 }
 0x1fc   :  { %v1171_v1 = vpop.f32.mrb[22].mxu1 }
 0x1fd   :  { %v1172_v2 = vpop.f32.mrb[23].mxu1 }
 0x1fe   :  { %v1173_v3 = vadd.f32 %v1172_v2, %v1171_v1 }
 0x218   :  { %v1206_v4 = vpop.f32.mrb[24].mxu1 }
 0x219   :  { %v1207_v5 = vpop.f32.mrb[25].mxu1 }
 0x21a   :  { %v1208_v24 = vadd.f32 %v1207_v5, %v1206_v4 }
 0x21c   :  { %v881_v7 = vadd.f32 %v1208_v24, %v1170_v63  ;;  %v1209_v8 = vpop.f32.mrb[26].mxu1 }
 0x21d   :  { %v1210_v9 = vpop.f32.mrb[27].mxu1 }
 0x21e   :  { %v1211_v11 = vadd.f32 %v1210_v9, %v1209_v8  ;;  %1330 = vmatprep.mubr.msk.f32.mxu1 %vm89_vm0, %v881_v7 }
 0x220   :  { %v886_v34 = vadd.f32 %v1211_v11, %v1173_v3 }
 0x222   :  { %1331 = vmatmul.mubr.msk.f32.vlgmr.msra.gmra.mrb[28].mxu1 %vm89_vm0, %v886_v34 }
 0x2f5   :  { %v1332_v13 = vpop.f32.mrb[28].mxu1 }
 0x2f6   :  { %v978_v15 = vadd.f32 %v1332_v13, %v1065_v12  ;;  %v972_v16 = vpop.f32.mrb[29].mxu1 }
 0x2f7   :  { %v973_v44 = vadd.f32 %v1065_v12, %v972_v16 }
 0x2f8   :  { %v982_v18 = vmax.f32 %v978_v15, 0.0 }
 0x2f9   :  { %v981_v19 = vmax.f32 %v973_v44, 0.0 }
 0x2fa   :  { %984 = vst [vmem:[#allocation2 + $0x8] sm:$0xff] %v982_v18 }
 0x2fb   :  { %983 = vst [vmem:[#allocation2] sm:$0xff] %v981_v19 }
 0x2fc   :  { %1431 = shalt.err (!%p1428_p4)
}
 0x2fd   :  { %s1432_s25 = scalar_lea.hbm %s1857_s5, 256 }
 0x2fe   :  { %p1433_p5 = scmp.ne.s32.totalorder %s1857_s5, %s1432_s25  ;;  %p1436_p6 = scmp.lt.u32.totalorder %s1432_s25, %s1857_s5 }
 0x300   :  { %p1438_p7 = pnand %p1436_p6, %p1433_p5 }
 0x302   :  { %1441 = shalt.err (!%p1438_p7)
}
 0x303   :  { %s1445_s29 = smov 128   ;;  %s1446_s1 = smov 8  }
 0x304   :  { %996 = dma.vmem_to_hbm [thread:$0]  %s991_s22, 256, %s1857_s5, [#allocation3], %s1445_s29, %s1445_s29, %s1446_s1  }
 0x305   :  { %1442 = dma.done.wait [#allocation3], 256  }
 0x306   :  { %1443 = vsyncadd [#allocation3], 4294967040 }
 0x307   :  { %1000 = vsyncpa [#allocation3], 1 }

</bundles_post_ra>
